<compile_context>
chip_gen: v7x
topology: tpu7x:2x2x1
jax: 0.10.0
libtpu: 0.0.40
codegen_flags: <defaults>
</compile_context>

<pallas_src>
import jax
import jax.numpy as jnp
from jax.experimental import pallas as pl
from jax.experimental.pallas import tpu as pltpu


D_IN, D_H1, D_H2, D_OUT = 32, 32, 64, 32
PACK = 4                      # batch rows packed along the 128-lane axis
LANES_IN = PACK * D_IN        # 128
LANES_H1 = PACK * D_H1        # 128
LANES_H2 = PACK * D_H2        # 256
LANES_OUT = PACK * D_OUT      # 128

# Packed-row tile cap: 2048 * 128 * 4 B = 1 MiB per x/out buffer (double
# buffered), plus ~3 MiB of f32 intermediates -> well inside scoped VMEM on
# v5e (16 MiB), v6e (32 MiB) and v7x (32 MiB of 64 MiB physical).
MAX_TILE_ROWS = 2048


def _mlp_kernel(x_ref, w1_ref, b1_ref, w2_ref, b2_ref, w3_ref, b3_ref, o_ref):
    # All in-kernel math in f32: the kernel is HBM-bound, so the bandwidth win
    # comes from the (optional) bf16 I/O dtype, while f32 elementwise keeps
    # v5e's non-bf16 VPU full-rate and matches the reference numerics.
    x = x_ref[...].astype(jnp.float32)

    h1 = jnp.dot(x, w1_ref[...].astype(jnp.float32),
                 preferred_element_type=jnp.float32)
    h1 = jnp.maximum(h1 + b1_ref[...], 0.0)

    h2 = jnp.dot(h1, w2_ref[...].astype(jnp.float32),
                 preferred_element_type=jnp.float32)
    h2 = jnp.maximum(h2 + b2_ref[...], 0.0)

    out = jnp.dot(h2, w3_ref[...].astype(jnp.float32),
                  preferred_element_type=jnp.float32)
    o_ref[...] = (out + b3_ref[...]).astype(o_ref.dtype)


def _block_diag4(w):
    """4x block-diagonal replica of an [in, out] weight -> [4*in, 4*out]."""
    return jnp.kron(jnp.eye(PACK, dtype=w.dtype), w)


def pack_params(params, io_dtype):
    """One-time host-side prep: block-diagonal weights + lane-tiled biases."""
    w1, b1, w2, b2, w3, b3 = params
    w1p = _block_diag4(w1).astype(io_dtype)
    w2p = _block_diag4(w2).astype(io_dtype)
    w3p = _block_diag4(w3).astype(io_dtype)
    # Biases stay f32 (tiny) and broadcast over the row tile in-kernel.
    b1p = jnp.tile(b1, (1, PACK)).astype(jnp.float32)
    b2p = jnp.tile(b2, (1, PACK)).astype(jnp.float32)
    b3p = jnp.tile(b3, (1, PACK)).astype(jnp.float32)
    return w1p, b1p, w2p, b2p, w3p, b3p


def _choose_tile(rows):
    """Pick a packed-row tile: VMEM-bounded, 8-sublane aligned, grid>=2 when
    there is enough work (so v7x's two TensorCores both get a share)."""
    if rows <= 16:
        return rows                      # single block == full array
    half = -(-rows // 2)                 # ceil(rows / 2)
    half = -(-half // 8) * 8             # round up to the 8-sublane granule
    return min(half, MAX_TILE_ROWS)


def cli_encoder_forward(x, params, *, tile_rows=None, io_dtype=None):
    """x: [B, 32] -> [B, 32] (dtype = io_dtype, default x.dtype)."""
    if io_dtype is None:
        io_dtype = x.dtype
    B = x.shape[0]

    # --- host-side layout plumbing (lane packing) -------------------------
    Bp = -(-B // PACK) * PACK
    if Bp != B:
        x = jnp.pad(x, ((0, Bp - B), (0, 0)))
    rows = Bp // PACK
    xp = x.reshape(rows, LANES_IN)

    tile = tile_rows if tile_rows is not None else _choose_tile(rows)
    padded_rows = -(-rows // tile) * tile
    if padded_rows != rows:
        xp = jnp.pad(xp, ((0, padded_rows - rows), (0, 0)))
    grid = (padded_rows // tile,)

    xp = xp.astype(io_dtype)
    w1, b1, w2, b2, w3, b3 = pack_params(params, io_dtype)

    # Weights/biases: constant index_map -> VMEM-resident across all grid steps.
    full = lambda shape: pl.BlockSpec(shape, lambda i: (0,) * len(shape))

    flops = 2 * padded_rows * (LANES_IN * LANES_H1
                               + LANES_H1 * LANES_H2
                               + LANES_H2 * LANES_OUT)
    itemsize = jnp.dtype(io_dtype).itemsize
    bytes_accessed = padded_rows * (LANES_IN + LANES_OUT) * itemsize \
        + (LANES_IN * LANES_H1 + LANES_H1 * LANES_H2 + LANES_H2 * LANES_OUT) * itemsize

    out_packed = pl.pallas_call(
        _mlp_kernel,
        out_shape=jax.ShapeDtypeStruct((padded_rows, LANES_OUT), io_dtype),
        grid=grid,
        in_specs=[
            pl.BlockSpec((tile, LANES_IN), lambda i: (i, 0)),   # x tile
            full((LANES_IN, LANES_H1)),                         # w1 (block-diag)
            full((1, LANES_H1)),                                # b1
            full((LANES_H1, LANES_H2)),                         # w2 (block-diag)
            full((1, LANES_H2)),                                # b2
            full((LANES_H2, LANES_OUT)),                        # w3 (block-diag)
            full((1, LANES_OUT)),                               # b3
        ],
        out_specs=pl.BlockSpec((tile, LANES_OUT), lambda i: (i, 0)),
        compiler_params=pltpu.CompilerParams(
            dimension_semantics=("parallel",),
            vmem_limit_bytes=32 * 1024 * 1024,
        ),
        cost_estimate=pl.CostEstimate(
            flops=flops, transcendentals=0, bytes_accessed=bytes_accessed),
    )(xp, w1, b1, w2, b2, w3, b3)

    # Unpack: [padded_rows,128] -> [B,32]
    return out_packed[:rows].reshape(Bp, D_OUT)[:B]


def init_params(key):
    """Mirror torch.nn.Linear default init (uniform(-1/sqrt(in), 1/sqrt(in)))."""
    keys = jax.random.split(key, 6)

    def linear(kw, kb, d_in, d_out):
        bound = 1.0 / jnp.sqrt(jnp.float32(d_in))
        # stored already transposed: [in, out]
        w = jax.random.uniform(kw, (d_in, d_out), jnp.float32, -bound, bound)
        b = jax.random.uniform(kb, (1, d_out), jnp.float32, -bound, bound)
        return w, b

    w1, b1 = linear(keys[0], keys[1], D_IN, D_H1)
    w2, b2 = linear(keys[2], keys[3], D_H1, D_H2)
    w3, b3 = linear(keys[4], keys[5], D_H2, D_OUT)
    return (w1, b1, w2, b2, w3, b3)


def reference_forward(x, params):
    w1, b1, w2, b2, w3, b3 = params
    h1 = jnp.maximum(x @ w1 + b1, 0.0)
    h2 = jnp.maximum(h1 @ w2 + b2, 0.0)
    return h2 @ w3 + b3


if __name__ == "__main__":
    key = jax.random.PRNGKey(0)
    k_x, k_p = jax.random.split(key)
    params = init_params(k_p)

    # 1) f32, tiny batch (single packed block, grid=1)
    B = 8
    x = jax.random.normal(k_x, (B, D_IN), jnp.float32)
    out = jax.block_until_ready(cli_encoder_forward(x, params))
    ref = reference_forward(x, params)
    assert out.shape == (B, D_OUT)
    assert jnp.allclose(out, ref, atol=1e-5, rtol=1e-5), "f32 mismatch vs reference"

    # 2) f32, batch not divisible by 4 and large enough to exercise grid>1 + padding
    B2 = 70
    x2 = jax.random.normal(k_x, (B2, D_IN), jnp.float32)
    out2 = jax.block_until_ready(cli_encoder_forward(x2, params))
    assert out2.shape == (B2, D_OUT)
    assert jnp.allclose(out2, reference_forward(x2, params), atol=1e-5, rtol=1e-5), \
        "tiled f32 mismatch vs reference"

    # 3) bf16 I/O path (HBM-bandwidth optimization), f32 accumulation in-kernel
    out_bf = jax.block_until_ready(
        cli_encoder_forward(x, params, io_dtype=jnp.bfloat16))
    assert out_bf.dtype == jnp.bfloat16
    assert jnp.allclose(out_bf.astype(jnp.float32), ref, atol=1e-1, rtol=1e-1), \
        "bf16 mismatch vs reference"

    print("KERNEL_OK")
</pallas_src>

<mosaic_0001>
module attributes {stable_mosaic.version = 11 : i64} {
  func.func @_mlp_kernel(%arg0: i32, %arg1: memref<2x128xf32, #tpu.memory_space<vmem>>, %arg2: memref<128x128xf32, #tpu.memory_space<vmem>>, %arg3: memref<1x128xf32, #tpu.memory_space<vmem>>, %arg4: memref<128x256xf32, #tpu.memory_space<vmem>>, %arg5: memref<1x256xf32, #tpu.memory_space<vmem>>, %arg6: memref<256x128xf32, #tpu.memory_space<vmem>>, %arg7: memref<1x128xf32, #tpu.memory_space<vmem>>, %arg8: memref<2x128xf32, #tpu.memory_space<vmem>>) attributes {dimension_semantics = [#tpu.dimension_semantics<parallel>], iteration_bounds = array<i64: 1>, scalar_prefetch = 0 : i64, scratch_operands = 0 : i64, tpu.core_type = #tpu.core_type<tc>, window_params = [{transform_indices = @transform_0, window_bounds = array<i64: 2, 128>}, {pipeline_mode = #tpu.pipeline_mode<synchronous>, transform_indices = @transform_1, window_bounds = array<i64: 128, 128>}, {pipeline_mode = #tpu.pipeline_mode<synchronous>, transform_indices = @transform_2, window_bounds = array<i64: 1, 128>}, {pipeline_mode = #tpu.pipeline_mode<synchronous>, transform_indices = @transform_3, window_bounds = array<i64: 128, 256>}, {pipeline_mode = #tpu.pipeline_mode<synchronous>, transform_indices = @transform_4, window_bounds = array<i64: 1, 256>}, {pipeline_mode = #tpu.pipeline_mode<synchronous>, transform_indices = @transform_5, window_bounds = array<i64: 256, 128>}, {pipeline_mode = #tpu.pipeline_mode<synchronous>, transform_indices = @transform_6, window_bounds = array<i64: 1, 128>}, {transform_indices = @transform_7, window_bounds = array<i64: 2, 128>}]} {
    %c0 = arith.constant 0 : index
    %c0_0 = arith.constant 0 : index
    %0 = vector.load %arg1[%c0, %c0_0] : memref<2x128xf32, #tpu.memory_space<vmem>>, vector<2x128xf32>
    %c0_1 = arith.constant 0 : index
    %c0_2 = arith.constant 0 : index
    %1 = vector.load %arg2[%c0_1, %c0_2] : memref<128x128xf32, #tpu.memory_space<vmem>>, vector<128x128xf32>
    %cst = arith.constant dense<0.000000e+00> : vector<2x128xf32>
    %2 = tpu.matmul %0, %1, %cst {dimension_numbers = #tpu.dot_dimension_numbers<[1], [0], [0], [1], [0, 0, 1, 1], [], []>} : vector<2x128xf32>, vector<128x128xf32>, vector<2x128xf32> -> vector<2x128xf32>
    %c0_3 = arith.constant 0 : index
    %c0_4 = arith.constant 0 : index
    %3 = vector.load %arg3[%c0_3, %c0_4] : memref<1x128xf32, #tpu.memory_space<vmem>>, vector<1x128xf32>
    %4 = vector.broadcast %3 : vector<1x128xf32> to vector<2x128xf32>
    %5 = arith.addf %2, %4 : vector<2x128xf32>
    %cst_5 = arith.constant 0.000000e+00 : f32
    %6 = vector.broadcast %cst_5 : f32 to vector<2x128xf32>
    %7 = arith.maximumf %5, %6 : vector<2x128xf32>
    %c0_6 = arith.constant 0 : index
    %c0_7 = arith.constant 0 : index
    %8 = vector.load %arg4[%c0_6, %c0_7] : memref<128x256xf32, #tpu.memory_space<vmem>>, vector<128x256xf32>
    %cst_8 = arith.constant dense<0.000000e+00> : vector<2x256xf32>
    %9 = tpu.matmul %7, %8, %cst_8 {dimension_numbers = #tpu.dot_dimension_numbers<[1], [0], [0], [1], [0, 0, 1, 1], [], []>} : vector<2x128xf32>, vector<128x256xf32>, vector<2x256xf32> -> vector<2x256xf32>
    %c0_9 = arith.constant 0 : index
    %c0_10 = arith.constant 0 : index
    %10 = vector.load %arg5[%c0_9, %c0_10] : memref<1x256xf32, #tpu.memory_space<vmem>>, vector<1x256xf32>
    %11 = vector.broadcast %10 : vector<1x256xf32> to vector<2x256xf32>
    %12 = arith.addf %9, %11 : vector<2x256xf32>
    %cst_11 = arith.constant 0.000000e+00 : f32
    %13 = vector.broadcast %cst_11 : f32 to vector<2x256xf32>
    %14 = arith.maximumf %12, %13 : vector<2x256xf32>
    %c0_12 = arith.constant 0 : index
    %c0_13 = arith.constant 0 : index
    %15 = vector.load %arg6[%c0_12, %c0_13] : memref<256x128xf32, #tpu.memory_space<vmem>>, vector<256x128xf32>
    %cst_14 = arith.constant dense<0.000000e+00> : vector<2x128xf32>
    %16 = tpu.matmul %14, %15, %cst_14 {dimension_numbers = #tpu.dot_dimension_numbers<[1], [0], [0], [1], [0, 0, 1, 1], [], []>} : vector<2x256xf32>, vector<256x128xf32>, vector<2x128xf32> -> vector<2x128xf32>
    %c0_15 = arith.constant 0 : index
    %c0_16 = arith.constant 0 : index
    %17 = vector.load %arg7[%c0_15, %c0_16] : memref<1x128xf32, #tpu.memory_space<vmem>>, vector<1x128xf32>
    %18 = vector.broadcast %17 : vector<1x128xf32> to vector<2x128xf32>
    %19 = arith.addf %16, %18 : vector<2x128xf32>
    %c0_17 = arith.constant 0 : index
    %c0_18 = arith.constant 0 : index
    %20 = vector.load %arg8[%c0_17, %c0_18] : memref<2x128xf32, #tpu.memory_space<vmem>>, vector<2x128xf32>
    tpu.vector_store %arg8[%c0_17, %c0_18], %19 {strides = array<i32>} : memref<2x128xf32, #tpu.memory_space<vmem>>, vector<2x128xf32>,
    return
  }
  func.func @transform_0(%arg0: i32) -> (i32, i32) {
    %c0_i32 = arith.constant 0 : i32
    %c0_i32_0 = arith.constant 0 : i32
    return %arg0, %c0_i32 : i32, i32
  }
  func.func @transform_1(%arg0: i32) -> (i32, i32) {
    %c0_i32 = arith.constant 0 : i32
    %c0_i32_0 = arith.constant 0 : i32
    %c0_i32_1 = arith.constant 0 : i32
    return %c0_i32, %c0_i32_0 : i32, i32
  }
  func.func @transform_2(%arg0: i32) -> (i32, i32) {
    %c0_i32 = arith.constant 0 : i32
    %c0_i32_0 = arith.constant 0 : i32
    %c0_i32_1 = arith.constant 0 : i32
    return %c0_i32, %c0_i32_0 : i32, i32
  }
  func.func @transform_3(%arg0: i32) -> (i32, i32) {
    %c0_i32 = arith.constant 0 : i32
    %c0_i32_0 = arith.constant 0 : i32
    %c0_i32_1 = arith.constant 0 : i32
    return %c0_i32, %c0_i32_0 : i32, i32
  }
  func.func @transform_4(%arg0: i32) -> (i32, i32) {
    %c0_i32 = arith.constant 0 : i32
    %c0_i32_0 = arith.constant 0 : i32
    %c0_i32_1 = arith.constant 0 : i32
    return %c0_i32, %c0_i32_0 : i32, i32
  }
  func.func @transform_5(%arg0: i32) -> (i32, i32) {
    %c0_i32 = arith.constant 0 : i32
    %c0_i32_0 = arith.constant 0 : i32
    %c0_i32_1 = arith.constant 0 : i32
    return %c0_i32, %c0_i32_0 : i32, i32
  }
  func.func @transform_6(%arg0: i32) -> (i32, i32) {
    %c0_i32 = arith.constant 0 : i32
    %c0_i32_0 = arith.constant 0 : i32
    %c0_i32_1 = arith.constant 0 : i32
    return %c0_i32, %c0_i32_0 : i32, i32
  }
  func.func @transform_7(%arg0: i32) -> (i32, i32) {
    %c0_i32 = arith.constant 0 : i32
    %c0_i32_0 = arith.constant 0 : i32
    return %arg0, %c0_i32 : i32, i32
  }
}

</mosaic_0001>

<bundles_post_ra>
// kernel: tpu_custom_call.1
= control target key start
LH: loop header
LB: loop body
LE: loop exit
PB: predicated region body
PF: predicated region fallthrough
CT: control target
= control target key end

     0   :  { %12 = vsyncpa [#allocation3], 0  ;;  %s861_s0 = inlined_call_operand.hbm [shape: f32[2,128], index: 0, kind: input, shape index: {}]   ;;  %s862_s1 = inlined_call_operand.hbm [shape: f32[128,128], index: 1, kind: input, shape index: {}]   ;;  %s863_s2 = inlined_call_operand.vmem [shape: f32[1,128], index: 2, kind: input, shape index: {}]   ;;  %s864_s3 = inlined_call_operand.hbm [shape: f32[128,256], index: 3, kind: input, shape index: {}]   ;;  %s865_s4 = inlined_call_operand.vmem [shape: f32[1,256], index: 4, kind: input, shape index: {}]   ;;  %s866_s5 = inlined_call_operand.hbm [shape: f32[256,128], index: 5, kind: input, shape index: {}]   ;;  %s867_s6 = inlined_call_operand.vmem [shape: f32[1,128], index: 6, kind: input, shape index: {}]   ;;  %s868_s7 = inlined_call_operand.hbm [shape: f32[2,128], index: 7, kind: output, shape index: {}]  }
   0x1   :  { %13 = vsyncpa [#allocation6], 0 }
   0x2   :  { %14 = vsyncpa [#allocation9], 0 }
   0x3   :  { %15 = vsyncpa [#allocation4], 0  ;;  %s726_s24 = smov [#allocation5]   ;;  %s608_s28 = scalar_lea.hbm %s862_s1, 2048 }
   0x4   :  { %s31_s25 = sshll.u32 %s726_s24, 4  ;;  %p609_p0 = scmp.ne.s32.totalorder %s862_s1, %s608_s28  ;;  %s32_s25 = int_to_ptr.vmem [resolvable:$true] %s31_s25 }
   0x5   :  { %p612_p1 = scmp.lt.u32.totalorder %s608_s28, %s862_s1 }
   0x7   :  { %p614_p2 = pnand %p612_p1, %p609_p0 }
   0x9   :  { %617 = shalt.err (!%p614_p2)
}
   0xa   :  { %s618_s10 = scalar_lea.vmem %s32_s25, 2048  ;;  %p623_p4 = scmp.lt.s32.totalorder %s32_s25, %s32_s25 }
   0xb   :  { %p619_p3 = scmp.ne.s32.totalorder %s32_s25, %s618_s10  ;;  %p624_p5 = scmp.lt.s32.totalorder %s618_s10, %s618_s10 }
   0xd   :  { %p625_p6 = por %p624_p5, %p623_p4 }
   0xf   :  { %p626_p7 = pnand %p625_p6, %p619_p3 }
  0x11   :  { %629 = shalt.err (!%p626_p7)
}
  0x12   :  { %s727_s11 = smov 128   ;;  %s728_s12 = smov 8  }
  0x13   :  { %37 = dma.hbm_to_vmem [thread:$0]  %s862_s1, 2048, %s32_s25, [#allocation6], %s727_s11, %s727_s11, %s728_s12  }
  0x14   :  { %s729_s15 = smov [#allocation2]   ;;  %s730_s17 = smov [#allocation7]  }
  0x15   :  { %s22_s16 = sshll.u32 %s729_s15, 4  ;;  %s45_s18 = sshll.u32 %s730_s17, 4  ;;  %s23_s16 = int_to_ptr.vmem [resolvable:$true] %s22_s16  ;;  %s46_s18 = int_to_ptr.vmem [resolvable:$true] %s45_s18 }
  0x16   :  { %s630_s21 = scalar_lea.hbm %s861_s0, 32 }
  0x17   :  { %p631_p8 = scmp.ne.s32.totalorder %s861_s0, %s630_s21  ;;  %p634_p9 = scmp.lt.u32.totalorder %s630_s21, %s861_s0 }
  0x19   :  { %p636_p10 = pnand %p634_p9, %p631_p8 }
  0x1b   :  { %639 = shalt.err (!%p636_p10)
}
  0x1c   :  { %s640_s1 = scalar_lea.vmem %s23_s16, 32  ;;  %p645_p12 = scmp.lt.s32.totalorder %s23_s16, %s23_s16 }
  0x1d   :  { %p641_p11 = scmp.ne.s32.totalorder %s23_s16, %s640_s1  ;;  %p646_p13 = scmp.lt.s32.totalorder %s640_s1, %s640_s1 }
  0x1f   :  { %p647_p0 = por %p646_p13, %p645_p12 }
  0x21   :  { %p648_p1 = pnand %p647_p0, %p641_p11 }
  0x23   :  { %651 = shalt.err (!%p648_p1)
}
  0x24   :  { %25 = dma.hbm_to_vmem [thread:$0]  %s861_s0, 32, %s23_s16, [#allocation3]  }
  0x25   :  { %s652_s30 = scalar_lea.hbm %s864_s3, 4096 }
  0x26   :  { %p653_p2 = scmp.ne.s32.totalorder %s864_s3, %s652_s30  ;;  %p656_p3 = scmp.lt.u32.totalorder %s652_s30, %s864_s3 }
  0x28   :  { %p658_p4 = pnand %p656_p3, %p653_p2 }
  0x2a   :  { %661 = shalt.err (!%p658_p4)
}
  0x2b   :  { %s662_s14 = scalar_lea.vmem %s46_s18, 4096  ;;  %p667_p6 = scmp.lt.s32.totalorder %s46_s18, %s46_s18 }
  0x2c   :  { %p663_p5 = scmp.ne.s32.totalorder %s46_s18, %s662_s14  ;;  %p668_p7 = scmp.lt.s32.totalorder %s662_s14, %s662_s14 }
  0x2e   :  { %p669_p8 = por %p668_p7, %p667_p6 }
  0x30   :  { %p670_p9 = pnand %p669_p8, %p663_p5 }
  0x32   :  { %673 = shalt.err (!%p670_p9)
}
  0x33   :  { %s731_s0 = smov 256   ;;  %s732_s15 = smov 16  }
  0x34   :  { %51 = dma.hbm_to_vmem [thread:$0]  %s864_s3, 4096, %s46_s18, [#allocation6], %s731_s0, %s731_s0, %s732_s15  }
  0x35   :  { %s733_s19 = smov [#allocation8]   ;;  %s674_s23 = scalar_lea.hbm %s866_s5, 4096 }
  0x36   :  { %s59_s20 = sshll.u32 %s733_s19, 4  ;;  %p675_p10 = scmp.ne.s32.totalorder %s866_s5, %s674_s23  ;;  %s60_s20 = int_to_ptr.vmem [resolvable:$true] %s59_s20 }
  0x37   :  { %p678_p11 = scmp.lt.u32.totalorder %s674_s23, %s866_s5 }
  0x39   :  { %p680_p12 = pnand %p678_p11, %p675_p10 }
  0x3b   :  { %683 = shalt.err (!%p680_p12)
}
  0x3c   :  { %s684_s27 = scalar_lea.vmem %s60_s20, 4096  ;;  %p689_p0 = scmp.lt.s32.totalorder %s60_s20, %s60_s20 }
  0x3d   :  { %p685_p13 = scmp.ne.s32.totalorder %s60_s20, %s684_s27  ;;  %p690_p1 = scmp.lt.s32.totalorder %s684_s27, %s684_s27 }
  0x3f   :  { %p691_p2 = por %p690_p1, %p689_p0 }
  0x41   :  { %p692_p3 = pnand %p691_p2, %p685_p13 }
  0x43   :  { %695 = shalt.err (!%p692_p3)
}
  0x44   :  { %65 = dma.hbm_to_vmem [thread:$0]  %s866_s5, 4096, %s60_s20, [#allocation9], %s727_s11, %s727_s11, %s728_s12  }
  0x45   :  { %718 = dma.done.wait [#allocation3], 32  }
  0x46   :  { %719 = vsyncadd [#allocation3], 4294967264 }
  0x47   :  { %720 = dma.done.wait [#allocation6], 6144  }
  0x48   :  { %721 = vsyncadd [#allocation6], 4294961152 }
  0x49   :  { %722 = dma.done.wait [#allocation9], 4096  }
  0x4a   :  { %723 = vsyncadd [#allocation9], 4294963200  ;;  %v734_v0 = vmov 0.0|0.0   ;;  %vm735_vm0 = vmmov 0   ;;  %v736_v1 = vmov 0.0   ;;  %v81_v2 = vld [vmem:[#allocation5] sm:$0xff] }
  0x4b   :  { %508 = vmatprep.subr.bf16.mxu0 %v734_v0  ;;  %505 = vmatprep.mubr.msk.f32.mxu0 %vm735_vm0, %v736_v1  ;;  %v82_v3 = vld [vmem:[#allocation5 + $0x8] sm:$0xff]  ;;  %v83_v4 = vld [vmem:[#allocation5 + $0x10] sm:$0xff]  ;;  %v84_v6 = vld [vmem:[#allocation5 + $0x18] sm:$0xff]  ;;  %s737_s30 = smov [#allocation10]  }
  0x4c   :  { %283 = vmatprep.mubr.f32.mxu1 %v736_v1  ;;  %v509_v5 = vpack.c.bf16 %v82_v3, %v81_v2  ;;  %v512_v7 = vpack.c.bf16 %v84_v6, %v83_v4  ;;  %v85_v8 = vld [vmem:[#allocation5 + $0x20] sm:$0xff]  ;;  %v86_v9 = vld [vmem:[#allocation5 + $0x28] sm:$0xff]  ;;  %v87_v11 = vld [vmem:[#allocation5 + $0x30] sm:$0xff]  ;;  %s408_s8 = sshll.u32 %s737_s30, 4  ;;  %s409_s8 = int_to_ptr.vmem [resolvable:$true] %s408_s8 }
  0x4d   :  { %v176_v10 = vld [vmem:[#allocation7 + $0x8] sm:$0xff]  ;;  %v88_v12 = vld [vmem:[#allocation5 + $0x38] sm:$0xff]  ;;  %v175_v14 = vld [vmem:[#allocation7] sm:$0xff]  ;;  %v515_v16 = vpack.c.bf16 %v86_v9, %v85_v8  ;;  %p701_p5 = scmp.lt.s32.totalorder %s409_s8, %s409_s8 }
  0x4e   :  { %510 = vmatpush3.bf16.msra.mxu0 %v509_v5  ;;  %v178_v13 = vld [vmem:[#allocation7 + $0x18] sm:$0xff]  ;;  %v177_v15 = vld [vmem:[#allocation7 + $0x10] sm:$0xff]  ;;  %v180_v19 = vld [vmem:[#allocation7 + $0x28] sm:$0xff]  ;;  %v518_v27 = vpack.c.bf16 %v88_v12, %v87_v11 }
  0x4f   :  { %511 = vmatprep.subr.bf16.mxu0 %v734_v0  ;;  %v532_v17 = vpack.c.bf16 %v178_v13, %v176_v10  ;;  %v534_v18 = vpack.c.bf16 %v177_v15, %v175_v14  ;;  %v182_v20 = vld [vmem:[#allocation7 + $0x38] sm:$0xff]  ;;  %v179_v21 = vld [vmem:[#allocation7 + $0x20] sm:$0xff]  ;;  %v181_v23 = vld [vmem:[#allocation7 + $0x30] sm:$0xff] }
  0x50   :  { %v536_v22 = vpack.c.bf16 %v182_v20, %v180_v19  ;;  %v184_v24 = vld [vmem:[#allocation7 + $0x48] sm:$0xff]  ;;  %v186_v25 = vld [vmem:[#allocation7 + $0x58] sm:$0xff]  ;;  %v538_v26 = vpack.c.bf16 %v181_v23, %v179_v21  ;;  %v89_v28 = vld [vmem:[#allocation5 + $0x40] sm:$0xff] }
  0x51   :  { %533 = vmatprep.subr.bf16.mxu1 %v532_v17  ;;  %v540_v29 = vpack.c.bf16 %v186_v25, %v184_v24  ;;  %v183_v30 = vld [vmem:[#allocation7 + $0x40] sm:$0xff]  ;;  %v185_v31 = vld [vmem:[#allocation7 + $0x50] sm:$0xff]  ;;  %v90_v32 = vld [vmem:[#allocation5 + $0x48] sm:$0xff] }
  0x52   :  { %513 = vmatpush3.bf16.msra.mxu0 %v512_v7  ;;  %535 = vmatpush1.bf16.msra.mxu1 %v534_v18  ;;  %v188_v33 = vld [vmem:[#allocation7 + $0x68] sm:$0xff]  ;;  %v190_v34 = vld [vmem:[#allocation7 + $0x78] sm:$0xff]  ;;  %v542_v35 = vpack.c.bf16 %v185_v31, %v183_v30  ;;  %v521_v36 = vpack.c.bf16 %v90_v32, %v89_v28  ;;  %v91_v37 = vld [vmem:[#allocation5 + $0x50] sm:$0xff] }
  0x53   :  { %514 = vmatprep.subr.bf16.mxu0 %v734_v0  ;;  %537 = vmatprep.subr.bf16.mxu1 %v536_v22  ;;  %v544_v38 = vpack.c.bf16 %v190_v34, %v188_v33  ;;  %v187_v39 = vld [vmem:[#allocation7 + $0x60] sm:$0xff]  ;;  %v189_v40 = vld [vmem:[#allocation7 + $0x70] sm:$0xff]  ;;  %v92_v41 = vld [vmem:[#allocation5 + $0x58] sm:$0xff] }
  0x54   :  { %v192_v42 = vld [vmem:[#allocation7 + $0x88] sm:$0xff]  ;;  %v194_v43 = vld [vmem:[#allocation7 + $0x98] sm:$0xff]  ;;  %v546_v44 = vpack.c.bf16 %v189_v40, %v187_v39  ;;  %v524_v45 = vpack.c.bf16 %v92_v41, %v91_v37  ;;  %v93_v46 = vld [vmem:[#allocation5 + $0x60] sm:$0xff] }
  0x55   :  { %v548_v47 = vpack.c.bf16 %v194_v43, %v192_v42  ;;  %v191_v48 = vld [vmem:[#allocation7 + $0x80] sm:$0xff]  ;;  %v193_v49 = vld [vmem:[#allocation7 + $0x90] sm:$0xff]  ;;  %v94_v50 = vld [vmem:[#allocation5 + $0x68] sm:$0xff] }
  0x56   :  { %516 = vmatpush3.bf16.msra.mxu0 %v515_v16  ;;  %539 = vmatpush1.bf16.msra.mxu1 %v538_v26  ;;  %v196_v51 = vld [vmem:[#allocation7 + $0xa8] sm:$0xff]  ;;  %v198_v52 = vld [vmem:[#allocation7 + $0xb8] sm:$0xff]  ;;  %v550_v53 = vpack.c.bf16 %v193_v49, %v191_v48  ;;  %v527_v54 = vpack.c.bf16 %v94_v50, %v93_v46  ;;  %v95_v55 = vld [vmem:[#allocation5 + $0x70] sm:$0xff] }
  0x57   :  { %517 = vmatprep.subr.bf16.mxu0 %v734_v0  ;;  %541 = vmatprep.subr.bf16.mxu1 %v540_v29  ;;  %v552_v56 = vpack.c.bf16 %v198_v52, %v196_v51  ;;  %v195_v57 = vld [vmem:[#allocation7 + $0xa0] sm:$0xff]  ;;  %v197_v58 = vld [vmem:[#allocation7 + $0xb0] sm:$0xff]  ;;  %v96_v59 = vld [vmem:[#allocation5 + $0x78] sm:$0xff] }
  0x58   :  { %v200_v60 = vld [vmem:[#allocation7 + $0xc8] sm:$0xff]  ;;  %v202_v61 = vld [vmem:[#allocation7 + $0xd8] sm:$0xff]  ;;  %v554_v62 = vpack.c.bf16 %v197_v58, %v195_v57  ;;  %v530_v63 = vpack.c.bf16 %v96_v59, %v95_v55  ;;  %v199_v2 = vld [vmem:[#allocation7 + $0xc0] sm:$0xff] }
  0x59   :  { %v556_v1 = vpack.c.bf16 %v202_v61, %v200_v60  ;;  %v201_v3 = vld [vmem:[#allocation7 + $0xd0] sm:$0xff]  ;;  %v80_v5 = vld [vmem:[#allocation2] sm:$0x3]  ;;  %v204_v6 = vld [vmem:[#allocation7 + $0xe8] sm:$0xff] }
  0x5a   :  { %519 = vmatpush3.bf16.msra.mxu0 %v518_v27  ;;  %543 = vmatpush1.bf16.msra.mxu1 %v542_v35  ;;  %v558_v4 = vpack.c.bf16 %v201_v3, %v199_v2  ;;  %v206_v7 = vld [vmem:[#allocation7 + $0xf8] sm:$0xff]  ;;  %v203_v9 = vld [vmem:[#allocation7 + $0xe0] sm:$0xff]  ;;  %v205_v10 = vld [vmem:[#allocation7 + $0xf0] sm:$0xff] }
  0x5b   :  { %520 = vmatprep.subr.bf16.mxu0 %v734_v0  ;;  %545 = vmatprep.subr.bf16.mxu1 %v544_v38  ;;  %v560_v8 = vpack.c.bf16 %v206_v7, %v204_v6  ;;  %v562_v11 = vpack.c.bf16 %v205_v10, %v203_v9  ;;  %v308_v12 = vld [vmem:[#allocation8 + $0x80] sm:$0xff]  ;;  %v309_v13 = vld [vmem:[#allocation8 + $0x88] sm:$0xff]  ;;  %v310_v16 = vld [vmem:[#allocation8 + $0x90] sm:$0xff] }
  0x5c   :  { %v292_v14 = vld [vmem:[#allocation8] sm:$0xff]  ;;  %v564_v15 = vpack.c.bf16 %v309_v13, %v308_v12  ;;  %v311_v17 = vld [vmem:[#allocation8 + $0x98] sm:$0xff]  ;;  %v294_v20 = vld [vmem:[#allocation8 + $0x10] sm:$0xff] }
  0x5d   :  { %v568_v19 = vpack.c.bf16 %v311_v17, %v310_v16  ;;  %v295_v21 = vld [vmem:[#allocation8 + $0x18] sm:$0xff]  ;;  %v312_v22 = vld [vmem:[#allocation8 + $0xa0] sm:$0xff]  ;;  %v313_v23 = vld [vmem:[#allocation8 + $0xa8] sm:$0xff] }
  0x5e   :  { %522 = vmatpush3.bf16.msra.mxu0 %v521_v36  ;;  %547 = vmatpush1.bf16.msra.mxu1 %v546_v44  ;;  %v570_v24 = vpack.c.bf16 %v295_v21, %v294_v20  ;;  %v572_v25 = vpack.c.bf16 %v313_v23, %v312_v22  ;;  %v296_v26 = vld [vmem:[#allocation8 + $0x20] sm:$0xff]  ;;  %v297_v27 = vld [vmem:[#allocation8 + $0x28] sm:$0xff]  ;;  %v314_v28 = vld [vmem:[#allocation8 + $0xb0] sm:$0xff] }
  0x5f   :  { %523 = vmatprep.subr.bf16.mxu0 %v734_v0  ;;  %549 = vmatprep.subr.bf16.mxu1 %v548_v47  ;;  %v315_v29 = vld [vmem:[#allocation8 + $0xb8] sm:$0xff]  ;;  %v574_v30 = vpack.c.bf16 %v297_v27, %v296_v26  ;;  %v298_v32 = vld [vmem:[#allocation8 + $0x30] sm:$0xff]  ;;  %v316_v34 = vld [vmem:[#allocation8 + $0xc0] sm:$0xff] }
  0x60   :  { %v576_v31 = vpack.c.bf16 %v315_v29, %v314_v28  ;;  %v299_v33 = vld [vmem:[#allocation8 + $0x38] sm:$0xff]  ;;  %v317_v35 = vld [vmem:[#allocation8 + $0xc8] sm:$0xff]  ;;  %v300_v38 = vld [vmem:[#allocation8 + $0x40] sm:$0xff] }
  0x61   :  { %v578_v36 = vpack.c.bf16 %v299_v33, %v298_v32  ;;  %v580_v37 = vpack.c.bf16 %v317_v35, %v316_v34  ;;  %v301_v39 = vld [vmem:[#allocation8 + $0x48] sm:$0xff]  ;;  %v318_v40 = vld [vmem:[#allocation8 + $0xd0] sm:$0xff]  ;;  %v319_v41 = vld [vmem:[#allocation8 + $0xd8] sm:$0xff] }
  0x62   :  { %525 = vmatpush3.bf16.msra.mxu0 %v524_v45  ;;  %551 = vmatpush1.bf16.msra.mxu1 %v550_v53  ;;  %v582_v42 = vpack.c.bf16 %v301_v39, %v300_v38  ;;  %v584_v43 = vpack.c.bf16 %v319_v41, %v318_v40  ;;  %v302_v44 = vld [vmem:[#allocation8 + $0x50] sm:$0xff]  ;;  %v303_v45 = vld [vmem:[#allocation8 + $0x58] sm:$0xff]  ;;  %v320_v46 = vld [vmem:[#allocation8 + $0xe0] sm:$0xff] }
  0x63   :  { %526 = vmatprep.subr.bf16.mxu0 %v734_v0  ;;  %553 = vmatprep.subr.bf16.mxu1 %v552_v56  ;;  %v321_v47 = vld [vmem:[#allocation8 + $0xe8] sm:$0xff]  ;;  %v586_v48 = vpack.c.bf16 %v303_v45, %v302_v44  ;;  %v419_v50 = vld [vmem:[%s863_s2] ss:$0 sm:$0xff]  ;;  %v304_v55 = vld [vmem:[#allocation8 + $0x60] sm:$0xff] }
  0x64   :  { %v588_v49 = vpack.c.bf16 %v321_v47, %v320_v46  ;;  %v305_v56 = vld [vmem:[#allocation8 + $0x68] sm:$0xff]  ;;  %v322_v58 = vld [vmem:[#allocation8 + $0xf0] sm:$0xff]  ;;  %v323_v59 = vld [vmem:[#allocation8 + $0xf8] sm:$0xff] }
  0x65   :  { %v590_v57 = vpack.c.bf16 %v305_v56, %v304_v55  ;;  %v592_v60 = vpack.c.bf16 %v323_v59, %v322_v58  ;;  %v306_v61 = vld [vmem:[#allocation8 + $0x70] sm:$0xff] }
  0x66   :  { %528 = vmatpush3.bf16.msra.mxu0 %v527_v54  ;;  %555 = vmatpush1.bf16.msra.mxu1 %v554_v62  ;;  %v307_v62 = vld [vmem:[#allocation8 + $0x78] sm:$0xff] }
  0x67   :  { %529 = vmatprep.subr.bf16.mxu0 %v734_v0  ;;  %557 = vmatprep.subr.bf16.mxu1 %v556_v1  ;;  %v293_v0 = vld [vmem:[#allocation8 + $0x8] sm:$0xff]  ;;  %v209_v1 = vlaneseq }
  0x68   :  { %v566_v18 = vpack.c.bf16 %v293_v0, %v292_v14 }
  0x69   :  { %v210_v2 = vshrl.u32 %v209_v1, 7 }
  0x6a   :  { %531 = vmatpush3.bf16.msra.mxu0 %v530_v63  ;;  %559 = vmatpush1.bf16.msra.mxu1 %v558_v4  ;;  %v594_v63 = vpack.c.bf16 %v307_v62, %v306_v61  ;;  %v207_v4 = vld [vmem:[%s865_s4] sm:$0x3]  ;;  %s696_s4 = scalar_lea.vmem %s409_s8, 32 }
  0x6b   :  { %561 = vmatprep.subr.bf16.mxu1 %v560_v8  ;;  %565 = vmatprep.subr.bf16.mxu0 %v564_v15  ;;  %v211_v3 = vsub.s32 0, %v210_v2  ;;  %v420_v15 = vld [vmem:[%s867_s6] ss:$0 sm:$0xff]  ;;  %p697_p4 = scmp.ne.s32.totalorder %s409_s8, %s696_s4  ;;  %p702_p6 = scmp.lt.s32.totalorder %s696_s4, %s696_s4 }
  0x6d   :  { %506 = vmatmul.mubr.f32.vlgmr.msra.gmra.mrb[0].mxu0 %v80_v5  ;;  %v215_v5 = vsub.s32 1, %v210_v2  ;;  %v212_v6 = vrot.slane %v207_v4, %v211_v3  ;;  %p703_p7 = por %p702_p6, %p701_p5 }
  0x6e   :  { %563 = vmatpush1.bf16.msra.mxu1 %v562_v11  ;;  %567 = vmatpush3.bf16.msra.mxu0 %v566_v18 }
  0x6f   :  { %569 = vmatprep.subr.bf16.mxu0 %v568_v19  ;;  %v216_v7 = vrot.slane %v207_v4, %v215_v5  ;;  %p704_p8 = pnand %p703_p7, %p697_p4 }
  0x72   :  { %571 = vmatpush3.bf16.msra.mxu0 %v570_v24 }
  0x73   :  { %573 = vmatprep.subr.bf16.mxu0 %v572_v25 }
  0x76   :  { %575 = vmatpush3.bf16.msra.mxu0 %v574_v30 }
  0x77   :  { %577 = vmatprep.subr.bf16.mxu0 %v576_v31 }
  0x7a   :  { %579 = vmatpush3.bf16.msra.mxu0 %v578_v36 }
  0x7b   :  { %581 = vmatprep.subr.bf16.mxu0 %v580_v37 }
  0x7e   :  { %583 = vmatpush3.bf16.msra.mxu0 %v582_v42 }
  0x7f   :  { %585 = vmatprep.subr.bf16.mxu0 %v584_v43 }
  0x82   :  { %587 = vmatpush3.bf16.msra.mxu0 %v586_v48 }
  0x83   :  { %589 = vmatprep.subr.bf16.mxu0 %v588_v49 }
  0x86   :  { %591 = vmatpush3.bf16.msra.mxu0 %v590_v57 }
  0x87   :  { %593 = vmatprep.subr.bf16.mxu0 %v592_v60 }
  0x8a   :  { %595 = vmatpush3.bf16.msra.mxu0 %v594_v63 }
 0x140   :  { %v170_v51 = vpop.f32.mrb[0].mxu0 }
 0x141   :  { %v171_v52 = vadd.f32 %v419_v50, %v170_v51  ;;  %v507_v53 = vpop.f32.mrb[1].mxu0 }
 0x143   :  { %v174_v54 = vmax.f32 %v171_v52, 0.0 }
 0x145   :  { %284 = vmatmul.mubr.f32.vlgmr.msra.gmra.mrb[0].mxu1 %v174_v54 }
 0x218   :  { %v285_v8 = vpop.f32.mrb[0].mxu1 }
 0x219   :  { %v286_v9 = vadd.f32 %v285_v8, %v212_v6  ;;  %v287_v10 = vpop.f32.mrb[1].mxu1 }
 0x21a   :  { %v288_v11 = vadd.f32 %v287_v10, %v216_v7 }
 0x21b   :  { %v290_v13 = vmax.f32 %v286_v9, 0.0 }
 0x21c   :  { %v291_v12 = vmax.f32 %v288_v11, 0.0 }
 0x21e   :  { %395 = vmatprep.mubr.f32.mxu0 %v291_v12 }
 0x21f   :  { %396 = vmatmul.mubr.f32.vlgmr.msra.gmra.mrb[2].mxu0 %v290_v13 }
 0x2f2   :  { %v470_v14 = vpop.f32.mrb[2].mxu0 }
 0x2f3   :  { %v471_v0 = vpop.f32.mrb[3].mxu0 }
 0x2f4   :  { %v472_v16 = vadd.f32 %v471_v0, %v470_v14 }
 0x2f6   :  { %v398_v17 = vadd.f32 %v472_v16, %v420_v15 }
 0x2f8   :  { %401 = vst [vmem:[#allocation10] sm:$0x3] %v398_v17 }
 0x2f9   :  { %707 = shalt.err (!%p704_p8)
}
 0x2fa   :  { %s708_s13 = scalar_lea.hbm %s868_s7, 32 }
 0x2fb   :  { %p709_p9 = scmp.ne.s32.totalorder %s868_s7, %s708_s13  ;;  %p712_p10 = scmp.lt.u32.totalorder %s708_s13, %s868_s7 }
 0x2fd   :  { %p714_p11 = pnand %p712_p10, %p709_p9 }
 0x2ff   :  { %717 = shalt.err (!%p714_p11)
}
 0x300   :  { %411 = dma.vmem_to_hbm [thread:$0]  %s409_s8, 32, %s868_s7, [#allocation4]  }
 0x301   :  { %724 = dma.done.wait [#allocation4], 32  }
 0x302   :  { %725 = vsyncadd [#allocation4], 4294967264 }
 0x303   :  { %415 = vsyncpa [#allocation3], 1 }
 0x304   :  { %416 = vsyncpa [#allocation6], 1 }
 0x305   :  { %417 = vsyncpa [#allocation9], 1 }
 0x306   :  { %418 = vsyncpa [#allocation4], 1 }

</bundles_post_ra>
